<compile_context>
chip_gen: v6e
topology: v6e:2x2x1
jax: 0.10.0
libtpu: 0.0.40
codegen_flags: <defaults>
</compile_context>

<pallas_src>
import functools

import jax
import jax.numpy as jnp
from jax.experimental import pallas as pl
from jax.experimental.pallas import tpu as pltpu


def actor_kernel(obs_ref, w1_ref, b1_ref, w2_ref, b2_ref, w3_ref, b3_ref,
                 out_ref, *, act_limit):
    # Layer 1: Linear + ReLU
    h = jnp.dot(obs_ref[...], w1_ref[...],
                preferred_element_type=jnp.float32) + b1_ref[...]
    h = jnp.maximum(h, 0.0)
    # Layer 2: Linear + ReLU
    h = jnp.dot(h, w2_ref[...],
                preferred_element_type=jnp.float32) + b2_ref[...]
    h = jnp.maximum(h, 0.0)
    # Output layer: Linear + Tanh (EUP), scaled by act_limit
    a = jnp.dot(h, w3_ref[...],
                preferred_element_type=jnp.float32) + b3_ref[...]
    out_ref[...] = act_limit * jnp.tanh(a)


def _round_up(x, m):
    return ((x + m - 1) // m) * m


def actor_forward(obs, params, act_limit, *, block_b=1024):
    """obs: [B, n_state] float32. params: dict of w1,b1,w2,b2,w3,b3.

    block_b: batch-tile size (rows per grid step). 1024 rows of obs+out at
    these feature widths is ~100 KiB f32, comfortably inside the scoped VMEM
    default on every generation (v5e/v6e 128 MiB, v7x 64 MiB physical).
    """
    B, n_state = obs.shape
    n_action = params["w3"].shape[1]

    # Tile size: multiple of 8 (sublane), capped at block_b.
    tb = min(block_b, _round_up(B, 8))
    b_pad = _round_up(B, tb)
    if b_pad != B:
        obs = jnp.pad(obs, ((0, b_pad - B), (0, 0)))
    grid = (b_pad // tb,)

    kernel = functools.partial(actor_kernel, act_limit=float(act_limit))

    def _const(i):                 # weights/biases: same block every step
        return (0, 0)

    out = pl.pallas_call(
        kernel,
        out_shape=jax.ShapeDtypeStruct((b_pad, n_action), jnp.float32),
        grid=grid,
        in_specs=[
            # obs: tiled over batch (lane axis = n_state, full extent)
            pl.BlockSpec((tb, n_state), lambda i: (i, 0)),
            # weights / biases: full arrays, VMEM-resident across grid steps
            pl.BlockSpec(params["w1"].shape, _const),
            pl.BlockSpec(params["b1"].shape, _const),
            pl.BlockSpec(params["w2"].shape, _const),
            pl.BlockSpec(params["b2"].shape, _const),
            pl.BlockSpec(params["w3"].shape, _const),
            pl.BlockSpec(params["b3"].shape, _const),
        ],
        out_specs=pl.BlockSpec((tb, n_action), lambda i: (i, 0)),
        compiler_params=pltpu.CompilerParams(
            dimension_semantics=("parallel",)),   # megacore-shardable on v7x
    )(obs, params["w1"], params["b1"], params["w2"], params["b2"],
      params["w3"], params["b3"])

    return out[:B]


def init_linear(key, fan_in, fan_out):
    """Deterministic init mimicking nn.Linear's U(-1/sqrt(fan_in), 1/sqrt(fan_in))."""
    kw, kb = jax.random.split(key)
    bound = 1.0 / jnp.sqrt(float(fan_in))
    # stored as [in, out] (transpose of PyTorch's [out, in])
    w = jax.random.uniform(kw, (fan_in, fan_out), jnp.float32, -bound, bound)
    b = jax.random.uniform(kb, (1, fan_out), jnp.float32, -bound, bound)
    return w, b


def reference_forward(obs, params, act_limit):
    h = jnp.maximum(obs @ params["w1"] + params["b1"], 0.0)
    h = jnp.maximum(h @ params["w2"] + params["b2"], 0.0)
    return act_limit * jnp.tanh(h @ params["w3"] + params["b3"])


if __name__ == "__main__":
    # Small shapes consistent with the module defaults.
    batch = 2
    n_state = 16
    layers = [30, 30]          # module default hidden sizes
    n_action = 8
    act_limit = 2.0

    key = jax.random.PRNGKey(0)
    k_obs, k1, k2, k3 = jax.random.split(key, 4)

    obs = jax.random.normal(k_obs, (batch, n_state), jnp.float32)

    w1, b1 = init_linear(k1, n_state, layers[0])
    w2, b2 = init_linear(k2, layers[0], layers[1])
    w3, b3 = init_linear(k3, layers[1], n_action)
    params = {"w1": w1, "b1": b1, "w2": w2, "b2": b2, "w3": w3, "b3": b3}

    # 1) Tiny batch (single grid step, padded 2 -> 8 rows).
    out = actor_forward(obs, params, act_limit)
    out = jax.block_until_ready(out)
    ref = reference_forward(obs, params, act_limit)
    assert out.shape == (batch, n_action)
    assert jnp.allclose(out, ref, atol=1e-5, rtol=1e-5)

    # 2) Ragged batch exercising the multi-step pipelined grid + padding.
    obs2 = jax.random.normal(jax.random.PRNGKey(1), (300, n_state), jnp.float32)
    out2 = jax.block_until_ready(
        actor_forward(obs2, params, act_limit, block_b=128))
    ref2 = reference_forward(obs2, params, act_limit)
    assert out2.shape == (300, n_action)
    assert jnp.allclose(out2, ref2, atol=1e-5, rtol=1e-5)

    print("KERNEL_OK")
</pallas_src>

<mosaic_0001>
module attributes {stable_mosaic.version = 11 : i64} {
  func.func @actor_kernel(%arg0: i32, %arg1: memref<8x16xf32, #tpu.memory_space<vmem>>, %arg2: memref<16x30xf32, #tpu.memory_space<vmem>>, %arg3: memref<1x30xf32, #tpu.memory_space<vmem>>, %arg4: memref<30x30xf32, #tpu.memory_space<vmem>>, %arg5: memref<1x30xf32, #tpu.memory_space<vmem>>, %arg6: memref<30x8xf32, #tpu.memory_space<vmem>>, %arg7: memref<1x8xf32, #tpu.memory_space<vmem>>, %arg8: memref<8x8xf32, #tpu.memory_space<vmem>>) attributes {dimension_semantics = [#tpu.dimension_semantics<parallel>], iteration_bounds = array<i64: 1>, scalar_prefetch = 0 : i64, scratch_operands = 0 : i64, tpu.core_type = #tpu.core_type<tc>, window_params = [{transform_indices = @transform_0, window_bounds = array<i64: 8, 16>}, {pipeline_mode = #tpu.pipeline_mode<synchronous>, transform_indices = @transform_1, window_bounds = array<i64: 16, 30>}, {pipeline_mode = #tpu.pipeline_mode<synchronous>, transform_indices = @transform_2, window_bounds = array<i64: 1, 30>}, {pipeline_mode = #tpu.pipeline_mode<synchronous>, transform_indices = @transform_3, window_bounds = array<i64: 30, 30>}, {pipeline_mode = #tpu.pipeline_mode<synchronous>, transform_indices = @transform_4, window_bounds = array<i64: 1, 30>}, {pipeline_mode = #tpu.pipeline_mode<synchronous>, transform_indices = @transform_5, window_bounds = array<i64: 30, 8>}, {pipeline_mode = #tpu.pipeline_mode<synchronous>, transform_indices = @transform_6, window_bounds = array<i64: 1, 8>}, {transform_indices = @transform_7, window_bounds = array<i64: 8, 8>}]} {
    %c0 = arith.constant 0 : index
    %c0_0 = arith.constant 0 : index
    %0 = vector.load %arg1[%c0, %c0_0] : memref<8x16xf32, #tpu.memory_space<vmem>>, vector<8x16xf32>
    %c0_1 = arith.constant 0 : index
    %c0_2 = arith.constant 0 : index
    %1 = vector.load %arg2[%c0_1, %c0_2] : memref<16x30xf32, #tpu.memory_space<vmem>>, vector<16x30xf32>
    %cst = arith.constant dense<0.000000e+00> : vector<8x30xf32>
    %2 = tpu.matmul %0, %1, %cst {dimension_numbers = #tpu.dot_dimension_numbers<[1], [0], [0], [1], [0, 0, 1, 1], [], []>} : vector<8x16xf32>, vector<16x30xf32>, vector<8x30xf32> -> vector<8x30xf32>
    %c0_3 = arith.constant 0 : index
    %c0_4 = arith.constant 0 : index
    %3 = vector.load %arg3[%c0_3, %c0_4] : memref<1x30xf32, #tpu.memory_space<vmem>>, vector<1x30xf32>
    %4 = vector.broadcast %3 : vector<1x30xf32> to vector<8x30xf32>
    %5 = arith.addf %2, %4 : vector<8x30xf32>
    %cst_5 = arith.constant 0.000000e+00 : f32
    %6 = vector.broadcast %cst_5 : f32 to vector<8x30xf32>
    %7 = arith.maximumf %5, %6 : vector<8x30xf32>
    %c0_6 = arith.constant 0 : index
    %c0_7 = arith.constant 0 : index
    %8 = vector.load %arg4[%c0_6, %c0_7] : memref<30x30xf32, #tpu.memory_space<vmem>>, vector<30x30xf32>
    %cst_8 = arith.constant dense<0.000000e+00> : vector<8x30xf32>
    %9 = tpu.matmul %7, %8, %cst_8 {dimension_numbers = #tpu.dot_dimension_numbers<[1], [0], [0], [1], [0, 0, 1, 1], [], []>} : vector<8x30xf32>, vector<30x30xf32>, vector<8x30xf32> -> vector<8x30xf32>
    %c0_9 = arith.constant 0 : index
    %c0_10 = arith.constant 0 : index
    %10 = vector.load %arg5[%c0_9, %c0_10] : memref<1x30xf32, #tpu.memory_space<vmem>>, vector<1x30xf32>
    %11 = vector.broadcast %10 : vector<1x30xf32> to vector<8x30xf32>
    %12 = arith.addf %9, %11 : vector<8x30xf32>
    %cst_11 = arith.constant 0.000000e+00 : f32
    %13 = vector.broadcast %cst_11 : f32 to vector<8x30xf32>
    %14 = arith.maximumf %12, %13 : vector<8x30xf32>
    %c0_12 = arith.constant 0 : index
    %c0_13 = arith.constant 0 : index
    %15 = vector.load %arg6[%c0_12, %c0_13] : memref<30x8xf32, #tpu.memory_space<vmem>>, vector<30x8xf32>
    %cst_14 = arith.constant dense<0.000000e+00> : vector<8x8xf32>
    %16 = tpu.matmul %14, %15, %cst_14 {dimension_numbers = #tpu.dot_dimension_numbers<[1], [0], [0], [1], [0, 0, 1, 1], [], []>} : vector<8x30xf32>, vector<30x8xf32>, vector<8x8xf32> -> vector<8x8xf32>
    %c0_15 = arith.constant 0 : index
    %c0_16 = arith.constant 0 : index
    %17 = vector.load %arg7[%c0_15, %c0_16] : memref<1x8xf32, #tpu.memory_space<vmem>>, vector<1x8xf32>
    %18 = vector.broadcast %17 : vector<1x8xf32> to vector<8x8xf32>
    %19 = arith.addf %16, %18 : vector<8x8xf32>
    %20 = math.tanh %19 : vector<8x8xf32>
    %cst_17 = arith.constant 2.000000e+00 : f32
    %21 = vector.broadcast %cst_17 : f32 to vector<8x8xf32>
    %22 = arith.mulf %21, %20 : vector<8x8xf32>
    %c0_18 = arith.constant 0 : index
    %c0_19 = arith.constant 0 : index
    %23 = vector.load %arg8[%c0_18, %c0_19] : memref<8x8xf32, #tpu.memory_space<vmem>>, vector<8x8xf32>
    tpu.vector_store %arg8[%c0_18, %c0_19], %22 {strides = array<i32>} : memref<8x8xf32, #tpu.memory_space<vmem>>, vector<8x8xf32>,
    return
  }
  func.func @transform_0(%arg0: i32) -> (i32, i32) {
    %c0_i32 = arith.constant 0 : i32
    %c0_i32_0 = arith.constant 0 : i32
    return %arg0, %c0_i32 : i32, i32
  }
  func.func @transform_1(%arg0: i32) -> (i32, i32) {
    %c0_i32 = arith.constant 0 : i32
    %c0_i32_0 = arith.constant 0 : i32
    %c0_i32_1 = arith.constant 0 : i32
    return %c0_i32, %c0_i32_0 : i32, i32
  }
  func.func @transform_2(%arg0: i32) -> (i32, i32) {
    %c0_i32 = arith.constant 0 : i32
    %c0_i32_0 = arith.constant 0 : i32
    %c0_i32_1 = arith.constant 0 : i32
    return %c0_i32, %c0_i32_0 : i32, i32
  }
  func.func @transform_3(%arg0: i32) -> (i32, i32) {
    %c0_i32 = arith.constant 0 : i32
    %c0_i32_0 = arith.constant 0 : i32
    %c0_i32_1 = arith.constant 0 : i32
    return %c0_i32, %c0_i32_0 : i32, i32
  }
  func.func @transform_4(%arg0: i32) -> (i32, i32) {
    %c0_i32 = arith.constant 0 : i32
    %c0_i32_0 = arith.constant 0 : i32
    %c0_i32_1 = arith.constant 0 : i32
    return %c0_i32, %c0_i32_0 : i32, i32
  }
  func.func @transform_5(%arg0: i32) -> (i32, i32) {
    %c0_i32 = arith.constant 0 : i32
    %c0_i32_0 = arith.constant 0 : i32
    %c0_i32_1 = arith.constant 0 : i32
    return %c0_i32, %c0_i32_0 : i32, i32
  }
  func.func @transform_6(%arg0: i32) -> (i32, i32) {
    %c0_i32 = arith.constant 0 : i32
    %c0_i32_0 = arith.constant 0 : i32
    %c0_i32_1 = arith.constant 0 : i32
    return %c0_i32, %c0_i32_0 : i32, i32
  }
  func.func @transform_7(%arg0: i32) -> (i32, i32) {
    %c0_i32 = arith.constant 0 : i32
    %c0_i32_0 = arith.constant 0 : i32
    return %arg0, %c0_i32 : i32, i32
  }
}

</mosaic_0001>

<bundles_post_ra>
// kernel: tpu_custom_call.1
= control target key start
LH: loop header
LB: loop body
LE: loop exit
PB: predicated region body
PF: predicated region fallthrough
CT: control target
= control target key end

     0   :  { %12 = vsyncpa [#allocation3], 0  ;;  %s556_s0 = inlined_call_operand.vmem [shape: f32[8,16], index: 0, kind: input, shape index: {}]   ;;  %s557_s1 = inlined_call_operand.hbm [shape: f32[16,30], index: 1, kind: input, shape index: {}]   ;;  %s558_s2 = inlined_call_operand.vmem [shape: f32[1,30], index: 2, kind: input, shape index: {}]   ;;  %s559_s3 = inlined_call_operand.vmem [shape: f32[30,30], index: 3, kind: input, shape index: {}]   ;;  %s560_s4 = inlined_call_operand.hbm [shape: f32[1,30], index: 4, kind: input, shape index: {}]   ;;  %s561_s5 = inlined_call_operand.vmem [shape: f32[30,8], index: 5, kind: input, shape index: {}]   ;;  %s562_s6 = inlined_call_operand.vmem [shape: f32[1,8], index: 6, kind: input, shape index: {}]   ;;  %s563_s7 = inlined_call_operand.hbm [shape: f32[8,8], index: 7, kind: output, shape index: {}]  }
   0x1   :  { %13 = vsyncpa [#allocation6], 0 }
   0x2   :  { %14 = vsyncpa [#allocation4], 0  ;;  %s460_s24 = smov [#allocation2]  }
   0x3   :  { %s22_s25 = sshll.u32 %s460_s24, 4  ;;  %s23_s25 = int_to_ptr.vmem [resolvable:$true] %s22_s25 }
   0x4   :  { %s402_s26 = scalar_lea.vmem %s23_s25, 256  ;;  %p407_p1 = scmp.lt.s32.totalorder %s23_s25, %s23_s25 }
   0x5   :  { %p403_p0 = scmp.ne.s32.totalorder %s23_s25, %s402_s26  ;;  %p408_p2 = scmp.lt.s32.totalorder %s402_s26, %s402_s26 }
   0x7   :  { %p409_p3 = por %p408_p2, %p407_p1 }
   0x9   :  { %p410_p4 = pnand %p409_p3, %p403_p0 }
   0xb   :  { %413 = shalt.err (!%p410_p4)
}
   0xc   :  { %s461_s27 = smov 128   ;;  %s462_s28 = smov 8  }
   0xd   :  { %28 = dma.hbm_to_vmem [thread:$0]  %s557_s1, 256, %s23_s25, [#allocation3], %s461_s27, %s461_s27, %s462_s28  }
   0xe   :  { %s463_s8 = smov [#allocation5]  }
   0xf   :  { %s39_s9 = sshll.u32 %s463_s8, 4  ;;  %s40_s9 = int_to_ptr.vmem [resolvable:$true] %s39_s9 }
  0x10   :  { %s422_s10 = scalar_lea.vmem %s40_s9, 16  ;;  %s426_s11 = scalar_lea.vmem %s40_s9, 32 }
  0x11   :  { %p423_p5 = scmp.ne.s32.totalorder %s40_s9, %s422_s10  ;;  %p427_p6 = scmp.lt.s32.totalorder %s40_s9, %s40_s9 }
  0x12   :  { %p428_p7 = scmp.lt.s32.totalorder %s426_s11, %s422_s10 }
  0x14   :  { %p429_p8 = por %p428_p7, %p427_p6 }
  0x16   :  { %p430_p9 = pnand %p429_p8, %p423_p5 }
  0x18   :  { %433 = shalt.err (!%p430_p9)
}
  0x19   :  { %42 = dma.hbm_to_vmem [thread:$0]  %s560_s4, 16, %s40_s9, [#allocation6]  }
  0x1a   :  { %454 = dma.done.wait [#allocation3], 256  }
  0x1b   :  { %455 = vsyncadd [#allocation3], 4294967040 }
  0x1c   :  { %456 = dma.done.wait [#allocation6], 16  }
  0x1d   :  { %457 = vsyncadd [#allocation6], 4294967280  ;;  %v464_v0 = vmov 0.0   ;;  %vm465_vm0 = vmmov 0   ;;  %vm153_vm1 = vcmask 1045504   ;;  %v55_v1 = vld [vmem:[#allocation2 + $0x8] sm:$0xff] }
  0x1e   :  { %356 = vmatprep.subr.mxu0 %v464_v0  ;;  %360 = vmatprep.mubr.msk.f32.mxu0 %vm465_vm0, %v464_v0  ;;  %v54_v2 = vld [vmem:[#allocation2] sm:$0xff]  ;;  %vm63_vm2 = vcmask 130048   ;;  %v141_v4 = vld [vmem:[%s559_s3 + $0x18] sm:$0x3f]  ;;  %v140_v5 = vld [vmem:[%s559_s3 + $0x10] sm:$0xff]  ;;  %vm149_vm3 = vcmask 244736  }
  0x1f   :  { %363 = vmatprep.subr.mxu1 %v464_v0  ;;  %371 = vmatprep.mubr.msk.f32.mxu1 %vm465_vm0, %v464_v0  ;;  %v53_v3 = vld [vmem:[%s556_s0] sm:$0xff]  ;;  %v139_v6 = vld [vmem:[%s559_s3 + $0x8] sm:$0xff]  ;;  %v231_v8 = vld [vmem:[%s561_s5 + $0x18] sm:$0x3f]  ;;  %s466_s8 = smov [#allocation7]   ;;  %vm317_vm4 = vcmask 64512  }
  0x20   :  { %357 = vmatpush3.msra.mxu0 %v55_v1  ;;  %364 = vmatpush3.msk.msra.mxu1 %vm153_vm1, %v141_v4  ;;  %v138_v7 = vld [vmem:[%s559_s3] sm:$0xff]  ;;  %v230_v14 = vld [vmem:[%s561_s5 + $0x10] sm:$0xff]  ;;  %v229_v15 = vld [vmem:[%s561_s5 + $0x8] sm:$0xff]  ;;  %s325_s9 = sshll.u32 %s466_s8, 4  ;;  %s326_s9 = int_to_ptr.vmem [resolvable:$true] %s325_s9 }
  0x21   :  { %358 = vmatprep.subr.mxu0 %v464_v0  ;;  %365 = vmatprep.subr.mxu1 %v464_v0  ;;  %v335_v9 = vld [vmem:[%s558_s2] ss:$0 sm:$0xff]  ;;  %v337_v17 = vld [vmem:[#allocation5] ss:$0 sm:$0xff]  ;;  %p439_p11 = scmp.lt.s32.totalorder %s326_s9, %s326_s9 }
  0x22   :  { %359 = vmatpush3.msra.mxu0 %v54_v2  ;;  %366 = vmatpush3.msra.mxu1 %v140_v5  ;;  %v228_v16 = vld [vmem:[%s561_s5] sm:$0xff]  ;;  %s434_s5 = scalar_lea.vmem %s326_s9, 128 }
  0x23   :  { %361 = vmatmul.mubr.msk.f32.vlgmr.msra.gmra.mxu0 %vm63_vm2, %v53_v3  ;;  %374 = vmatprep.subr.mxu0 %v464_v0  ;;  %v340_v22 = vld [vmem:[%s562_s6] ss:$0 sm:$0xff]  ;;  %p435_p10 = scmp.ne.s32.totalorder %s326_s9, %s434_s5  ;;  %p440_p12 = scmp.lt.s32.totalorder %s434_s5, %s434_s5 }
  0x24   :  { %382 = vmatprep.mubr.msk.f32.mxu0 %vm465_vm0, %v464_v0  ;;  %367 = vmatprep.subr.mxu1 %v464_v0 }
  0x25   :  { %368 = vmatpush3.msra.mxu1 %v139_v6  ;;  %375 = vmatpush3.msk.msra.mxu0 %vm153_vm1, %v231_v8  ;;  %p441_p13 = por %p440_p12, %p439_p11 }
  0x26   :  { %369 = vmatprep.subr.mxu1 %v464_v0  ;;  %376 = vmatprep.subr.mxu0 %v464_v0 }
  0x27   :  { %370 = vmatpush3.msra.mxu1 %v138_v7  ;;  %377 = vmatpush3.msra.mxu0 %v230_v14  ;;  %p442_p0 = pnand %p441_p13, %p435_p10 }
  0x28   :  { %378 = vmatprep.subr.mxu0 %v464_v0 }
  0x29   :  { %379 = vmatpush3.msra.mxu0 %v229_v15 }
  0x2a   :  { %380 = vmatprep.subr.mxu0 %v464_v0 }
  0x2b   :  { %381 = vmatpush3.msra.mxu0 %v228_v16 }
  0xe3   :  { %v133_v10 = vpop.f32.mrf.mxu0 }
  0xe4   :  { %v134_v11 = vadd.f32 %v335_v9, %v133_v10 }
  0xe5   :  { %v362_v12 = vpop.f32.mrf.mxu0 }
  0xe6   :  { %v137_v13 = vmax.f32 %v134_v11, 0.0 }
  0xe8   :  { %372 = vmatmul.mubr.msk.f32.vlgmr.msra.gmra.mxu1 %vm149_vm3, %v137_v13 }
 0x1a8   :  { %v223_v18 = vpop.f32.mrf.mxu1 }
 0x1a9   :  { %v224_v19 = vadd.f32 %v337_v17, %v223_v18 }
 0x1aa   :  { %v373_v20 = vpop.f32.mrf.mxu1 }
 0x1ab   :  { %v227_v21 = vmax.f32 %v224_v19, 0.0 }
 0x1ad   :  { %383 = vmatmul.mubr.msk.f32.vlgmr.msra.gmra.mxu0 %vm149_vm3, %v227_v21 }
 0x26d   :  { %v311_v23 = vpop.f32.mrf.mxu0 }
 0x26e   :  { %v312_v24 = vadd.f32 %v340_v22, %v311_v23 }
 0x26f   :  { %v384_v25 = vpop.f32.mrf.mxu0 }
 0x270   :  { %392 = vtanh.f32 %v312_v24 }
 0x27d   :  { %v393_v26 = vpop.eup %392 }
 0x27e   :  { %v316_v27 = vmul.f32 2.0, %v393_v26 }
 0x280   :  { %318 = vst.msk [vmem:[#allocation7] sm:$0xff] %vm317_vm4, %v316_v27 }
 0x281   :  { %445 = shalt.err (!%p442_p0)
}
 0x282   :  { %328 = dma.vmem_to_hbm [thread:$0]  %s326_s9, 128, %s563_s7, [#allocation4]  }
 0x283   :  { %458 = dma.done.wait [#allocation4], 128  }
 0x284   :  { %459 = vsyncadd [#allocation4], 4294967168 }
 0x285   :  { %332 = vsyncpa [#allocation3], 1 }
 0x286   :  { %333 = vsyncpa [#allocation6], 1 }
 0x287   :  { %334 = vsyncpa [#allocation4], 1 }

</bundles_post_ra>
